<compile_context>
chip_gen: v5e
topology: v5e:2x2
jax: 0.10.0
libtpu: 0.0.40
codegen_flags: <defaults>
</compile_context>

<pallas_src>
import functools

import jax
import jax.numpy as jnp
from jax.experimental import pallas as pl
from jax.experimental.pallas import tpu as pltpu


def _round_up(v, m):
    return (v + m - 1) // m * m


def powl_kernel(x_ref, p1_ref, p2_ref, w1t_ref, w2t_ref, b_ref, o_ref,
                acc_ref, o1c_ref, o2c_ref):
    j = pl.program_id(1)                       # out_x tile index
    k = pl.program_id(2)                       # in_x (reduction) tile index

    # --- accumulator init: fold the bias in instead of a separate final add ---
    @pl.when(k == 0)
    def _init():
        acc_ref[...] = jnp.broadcast_to(b_ref[...], acc_ref.shape)

    # --- pow activations: compute once per (i, k) x-tile, cache across j ------
    @pl.when(j == 0)
    def _activations():
        x = jnp.maximum(x_ref[...], 0.0)       # clamp(min=0), [tm, tk]
        lx = jnp.log(x)                        # shared log; -inf at x==0, masked below
        p1 = p1_ref[...]                       # [1, tk] broadcasts over rows
        p2 = p2_ref[...]
        o1 = jnp.exp(p1 * lx)
        o2 = jnp.exp(p2 * lx)
        # torch.pow semantics at x == 0:  p==0 -> 1, p>0 -> 0, p<0 -> inf (zeroed anyway)
        at_zero = x == 0.0
        o1 = jnp.where(at_zero, jnp.where(p1 == 0.0, 1.0, 0.0), o1)
        o2 = jnp.where(at_zero, jnp.where(p2 == 0.0, 1.0, 0.0), o2)
        # torch.where(isinf(o), 0, o)  (overflow for large x / large p)
        o1 = jnp.where(jnp.isinf(o1), 0.0, o1)
        o2 = jnp.where(jnp.isinf(o2), 0.0, o2)
        o1c_ref[k] = o1
        o2c_ref[k] = o2

    o1 = o1c_ref[k]
    o2 = o2c_ref[k]

    # Weights are pre-transposed to [in_x, out_x] -> plain MXU matmul, no .T
    acc_ref[...] += jnp.dot(o1, w1t_ref[...], preferred_element_type=jnp.float32)
    acc_ref[...] += jnp.dot(o2, w2t_ref[...], preferred_element_type=jnp.float32)

    @pl.when(k == pl.num_programs(2) - 1)
    def _store():
        o_ref[...] = acc_ref[...].astype(o_ref.dtype)


@functools.partial(jax.jit, static_argnames=("tm", "tn", "tk"))
def powl_forward(x, pow1, pow2, w1, w2, b, *, tm=256, tn=256, tk=512):
    x = x.astype(jnp.float32)
    B, in_x = x.shape
    out_x = w1.shape[0]

    # ---- tile sizes: shrink to the (aligned) problem when it is small --------
    tm = min(tm, _round_up(B, 8))              # sublane multiple
    tk = min(tk, _round_up(in_x, 128))         # lane multiple
    tn = min(tn, _round_up(out_x, 128))        # lane-dense output tiles
    B_p = _round_up(B, tm)
    in_p = _round_up(in_x, tk)
    out_p = _round_up(out_x, tn)
    n_k = in_p // tk
    grid = (B_p // tm, out_p // tn, n_k)

    # ---- pad to lane-dense shapes (padded features contribute exactly 0) -----
    x_p = jnp.pad(x, ((0, B_p - B), (0, in_p - in_x)))
    # pad pow with 1.0 so 0**1 == 0 (no inf on padded features)
    pow1_p = jnp.pad(pow1.astype(jnp.float32), (0, in_p - in_x),
                     constant_values=1.0).reshape(1, in_p)
    pow2_p = jnp.pad(pow2.astype(jnp.float32), (0, in_p - in_x),
                     constant_values=1.0).reshape(1, in_p)
    # pad weights with 0 and pre-transpose to [in_p, out_p]
    w1t_p = jnp.pad(w1.astype(jnp.float32),
                    ((0, out_p - out_x), (0, in_p - in_x))).T
    w2t_p = jnp.pad(w2.astype(jnp.float32),
                    ((0, out_p - out_x), (0, in_p - in_x))).T
    b_p = jnp.pad(b.astype(jnp.float32), (0, out_p - out_x)).reshape(1, out_p)

    # ---- VMEM budget (double-buffered blocks + scratch) + cost estimate ------
    blk_bytes = 4 * (tm * tk + 2 * tk + 2 * tk * tn + tn + tm * tn)
    scratch_bytes = 4 * (tm * tn + 2 * n_k * tm * tk)
    vmem_limit = min(56 * 1024 * 1024,
                     max(32 * 1024 * 1024,
                         int(1.5 * (2 * blk_bytes + scratch_bytes)) + (4 << 20)))

    cost = pl.CostEstimate(
        flops=4 * B_p * in_p * out_p,                 # two matmuls
        transcendentals=3 * B_p * in_p,               # one log + two exp per elem
        bytes_accessed=4 * (B_p * in_p + 2 * in_p * out_p + B_p * out_p
                            + 2 * in_p + out_p),
    )

    out_padded = pl.pallas_call(
        powl_kernel,
        out_shape=jax.ShapeDtypeStruct((B_p, out_p), jnp.float32),
        grid_spec=pltpu.PrefetchScalarGridSpec(
            num_scalar_prefetch=0,
            grid=grid,
            in_specs=[
                pl.BlockSpec((tm, tk), lambda i, j, k: (i, k)),   # x
                pl.BlockSpec((1, tk), lambda i, j, k: (0, k)),    # pow1
                pl.BlockSpec((1, tk), lambda i, j, k: (0, k)),    # pow2
                pl.BlockSpec((tk, tn), lambda i, j, k: (k, j)),   # w1.T
                pl.BlockSpec((tk, tn), lambda i, j, k: (k, j)),   # w2.T
                pl.BlockSpec((1, tn), lambda i, j, k: (0, j)),    # b
            ],
            out_specs=pl.BlockSpec((tm, tn), lambda i, j, k: (i, j)),
            scratch_shapes=[
                pltpu.VMEM((tm, tn), jnp.float32),         # f32 accumulator
                pltpu.VMEM((n_k, tm, tk), jnp.float32),    # cached o1 (per batch tile)
                pltpu.VMEM((n_k, tm, tk), jnp.float32),    # cached o2
            ],
        ),
        compiler_params=pltpu.CompilerParams(
            # batch axis shards across TensorCores (v7x); j/k stay sequential so
            # the per-batch-tile activation cache filled at j==0 is always valid.
            dimension_semantics=("parallel", "arbitrary", "arbitrary"),
            vmem_limit_bytes=vmem_limit,
        ),
        cost_estimate=cost,
    )(x_p, pow1_p, pow2_p, w1t_p, w2t_p, b_p)

    return out_padded[:B, :out_x]


def powl_reference(x, pow1, pow2, w1, w2, b):
    # Independent pure-JAX reference mirroring the torch forward exactly.
    x1 = jnp.maximum(x, 0.0)
    o1 = jnp.power(x1, pow1[None, :])
    o2 = jnp.power(x1, pow2[None, :])
    o1 = jnp.where(jnp.isinf(o1), 0.0, o1)
    o2 = jnp.where(jnp.isinf(o2), 0.0, o2)
    return o1 @ w1.T + o2 @ w2.T + b[None, :]


if __name__ == "__main__":
    key = jax.random.PRNGKey(0)
    B, in_x, out_x = 8, 32, 16
    k1, k2, k3, k4, k5, k6 = jax.random.split(key, 6)

    x = jax.random.normal(k1, (B, in_x), dtype=jnp.float32)
    # exercise x == 0 and the negative-x (clamped) paths
    x = x.at[0, 0].set(0.0).at[1, 1].set(-2.0)

    pow1 = jax.random.uniform(k2, (in_x,), minval=0.25, maxval=1.5,
                              dtype=jnp.float32)
    pow2 = jax.random.uniform(k3, (in_x,), minval=0.25, maxval=1.5,
                              dtype=jnp.float32)
    # special branches: p == 0 at x == 0 (-> 1), p < 0 at x == 0 (inf -> 0)
    pow1 = pow1.at[0].set(0.0)
    pow2 = pow2.at[0].set(-0.5)

    w1 = jax.random.normal(k4, (out_x, in_x), dtype=jnp.float32) * 0.1
    w2 = jax.random.normal(k5, (out_x, in_x), dtype=jnp.float32) * 0.1
    b = jax.random.normal(k6, (out_x,), dtype=jnp.float32)

    out = powl_forward(x, pow1, pow2, w1, w2, b)
    jax.block_until_ready(out)

    ref = powl_reference(x, pow1, pow2, w1, w2, b)
    assert out.shape == (B, out_x)
    assert jnp.allclose(out, ref, atol=1e-4, rtol=1e-4), "mismatch vs reference"

    print("KERNEL_OK")
</pallas_src>

<mosaic_0001>
module attributes {stable_mosaic.version = 11 : i64} {
  func.func @powl_kernel(%arg0: i32, %arg1: i32, %arg2: i32, %arg3: memref<8x128xf32, #tpu.memory_space<vmem>>, %arg4: memref<1x128xf32, #tpu.memory_space<vmem>>, %arg5: memref<1x128xf32, #tpu.memory_space<vmem>>, %arg6: memref<128x128xf32, #tpu.memory_space<vmem>>, %arg7: memref<128x128xf32, #tpu.memory_space<vmem>>, %arg8: memref<1x128xf32, #tpu.memory_space<vmem>>, %arg9: memref<8x128xf32, #tpu.memory_space<vmem>>, %arg10: memref<8x128xf32, #tpu.memory_space<vmem>>, %arg11: memref<1x8x128xf32, #tpu.memory_space<vmem>>, %arg12: memref<1x8x128xf32, #tpu.memory_space<vmem>>) attributes {dimension_semantics = [#tpu.dimension_semantics<parallel>, #tpu.dimension_semantics<arbitrary>, #tpu.dimension_semantics<arbitrary>], iteration_bounds = array<i64: 1, 1, 1>, scalar_prefetch = 0 : i64, scratch_operands = 3 : i64, tpu.core_type = #tpu.core_type<tc>, window_params = [{transform_indices = @transform_0, window_bounds = array<i64: 8, 128>}, {transform_indices = @transform_1, window_bounds = array<i64: 1, 128>}, {transform_indices = @transform_2, window_bounds = array<i64: 1, 128>}, {transform_indices = @transform_3, window_bounds = array<i64: 128, 128>}, {transform_indices = @transform_4, window_bounds = array<i64: 128, 128>}, {transform_indices = @transform_5, window_bounds = array<i64: 1, 128>}, {transform_indices = @transform_6, window_bounds = array<i64: 8, 128>}]} {
    %c0_i32 = arith.constant 0 : i32
    %0 = arith.cmpi eq, %arg2, %c0_i32 : i32
    %1 = arith.extui %0 : i1 to i32
    %c0_i32_0 = arith.constant 0 : i32
    %2 = arith.cmpi ne, %1, %c0_i32_0 : i32
    scf.if %2 {
      %c0_21 = arith.constant 0 : index
      %c0_22 = arith.constant 0 : index
      %25 = vector.load %arg8[%c0_21, %c0_22] : memref<1x128xf32, #tpu.memory_space<vmem>>, vector<1x128xf32>
      %26 = vector.shape_cast %25 : vector<1x128xf32> to vector<1x128xf32>
      %27 = vector.broadcast %26 : vector<1x128xf32> to vector<8x128xf32>
      %c0_23 = arith.constant 0 : index
      %c0_24 = arith.constant 0 : index
      %28 = vector.load %arg10[%c0_23, %c0_24] : memref<8x128xf32, #tpu.memory_space<vmem>>, vector<8x128xf32>
      tpu.vector_store %arg10[%c0_23, %c0_24], %27 {strides = array<i32>} : memref<8x128xf32, #tpu.memory_space<vmem>>, vector<8x128xf32>,
    } else {
    }
    %c0_i32_1 = arith.constant 0 : i32
    %3 = arith.cmpi eq, %arg1, %c0_i32_1 : i32
    %4 = arith.extui %3 : i1 to i32
    %c0_i32_2 = arith.constant 0 : i32
    %5 = arith.cmpi ne, %4, %c0_i32_2 : i32
    scf.if %5 {
      %c0_21 = arith.constant 0 : index
      %c0_22 = arith.constant 0 : index
      %25 = vector.load %arg3[%c0_21, %c0_22] : memref<8x128xf32, #tpu.memory_space<vmem>>, vector<8x128xf32>
      %cst_23 = arith.constant 0.000000e+00 : f32
      %26 = vector.broadcast %cst_23 : f32 to vector<8x128xf32>
      %27 = arith.maximumf %25, %26 : vector<8x128xf32>
      %28 = math.log %27 : vector<8x128xf32>
      %c0_24 = arith.constant 0 : index
      %c0_25 = arith.constant 0 : index
      %29 = vector.load %arg4[%c0_24, %c0_25] : memref<1x128xf32, #tpu.memory_space<vmem>>, vector<1x128xf32>
      %c0_26 = arith.constant 0 : index
      %c0_27 = arith.constant 0 : index
      %30 = vector.load %arg5[%c0_26, %c0_27] : memref<1x128xf32, #tpu.memory_space<vmem>>, vector<1x128xf32>
      %31 = vector.broadcast %29 : vector<1x128xf32> to vector<8x128xf32>
      %32 = arith.mulf %31, %28 : vector<8x128xf32>
      %33 = math.exp %32 : vector<8x128xf32>
      %34 = vector.broadcast %30 : vector<1x128xf32> to vector<8x128xf32>
      %35 = arith.mulf %34, %28 : vector<8x128xf32>
      %36 = math.exp %35 : vector<8x128xf32>
      %cst_28 = arith.constant 0.000000e+00 : f32
      %37 = vector.broadcast %cst_28 : f32 to vector<8x128xf32>
      %38 = arith.cmpf oeq, %27, %37 : vector<8x128xf32>
      %cst_29 = arith.constant 0.000000e+00 : f32
      %39 = vector.broadcast %cst_29 : f32 to vector<1x128xf32>
      %40 = arith.cmpf oeq, %29, %39 : vector<1x128xf32>
      %cst_30 = arith.constant 1.000000e+00 : f32
      %cst_31 = arith.constant 0.000000e+00 : f32
      %41 = vector.broadcast %cst_30 : f32 to vector<1x128xf32>
      %42 = vector.broadcast %cst_31 : f32 to vector<1x128xf32>
      %43 = arith.select %40, %41, %42 : vector<1x128xi1>, vector<1x128xf32>
      %44 = vector.shape_cast %43 : vector<1x128xf32> to vector<1x128xf32>
      %45 = vector.broadcast %44 : vector<1x128xf32> to vector<8x128xf32>
      %46 = arith.select %38, %45, %33 : vector<8x128xi1>, vector<8x128xf32>
      %cst_32 = arith.constant 0.000000e+00 : f32
      %47 = vector.broadcast %cst_32 : f32 to vector<1x128xf32>
      %48 = arith.cmpf oeq, %30, %47 : vector<1x128xf32>
      %cst_33 = arith.constant 1.000000e+00 : f32
      %cst_34 = arith.constant 0.000000e+00 : f32
      %49 = vector.broadcast %cst_33 : f32 to vector<1x128xf32>
      %50 = vector.broadcast %cst_34 : f32 to vector<1x128xf32>
      %51 = arith.select %48, %49, %50 : vector<1x128xi1>, vector<1x128xf32>
      %52 = vector.shape_cast %51 : vector<1x128xf32> to vector<1x128xf32>
      %53 = vector.broadcast %52 : vector<1x128xf32> to vector<8x128xf32>
      %54 = arith.select %38, %53, %36 : vector<8x128xi1>, vector<8x128xf32>
      %55 = math.absf %46 : vector<8x128xf32>
      %cst_35 = arith.constant 0x7F800000 : f32
      %56 = vector.broadcast %cst_35 : f32 to vector<8x128xf32>
      %57 = arith.cmpf oeq, %55, %56 : vector<8x128xf32>
      %cst_36 = arith.constant 0.000000e+00 : f32
      %58 = vector.broadcast %cst_36 : f32 to vector<8x128xf32>
      %59 = arith.select %57, %58, %46 : vector<8x128xi1>, vector<8x128xf32>
      %60 = math.absf %54 : vector<8x128xf32>
      %cst_37 = arith.constant 0x7F800000 : f32
      %61 = vector.broadcast %cst_37 : f32 to vector<8x128xf32>
      %62 = arith.cmpf oeq, %60, %61 : vector<8x128xf32>
      %cst_38 = arith.constant 0.000000e+00 : f32
      %63 = vector.broadcast %cst_38 : f32 to vector<8x128xf32>
      %64 = arith.select %62, %63, %54 : vector<8x128xi1>, vector<8x128xf32>
      %65 = arith.index_cast %arg2 : i32 to index
      %c0_39 = arith.constant 0 : index
      %c0_40 = arith.constant 0 : index
      %66 = vector.load %arg11[%65, %c0_39, %c0_40] : memref<1x8x128xf32, #tpu.memory_space<vmem>>, vector<1x8x128xf32>
      %67 = vector.shape_cast %66 : vector<1x8x128xf32> to vector<8x128xf32>
      %68 = vector.shape_cast %59 : vector<8x128xf32> to vector<1x8x128xf32>
      tpu.vector_store %arg11[%65, %c0_39, %c0_40], %68 {strides = array<i32>} : memref<1x8x128xf32, #tpu.memory_space<vmem>>, vector<1x8x128xf32>,
      %69 = arith.index_cast %arg2 : i32 to index
      %c0_41 = arith.constant 0 : index
      %c0_42 = arith.constant 0 : index
      %70 = vector.load %arg12[%69, %c0_41, %c0_42] : memref<1x8x128xf32, #tpu.memory_space<vmem>>, vector<1x8x128xf32>
      %71 = vector.shape_cast %70 : vector<1x8x128xf32> to vector<8x128xf32>
      %72 = vector.shape_cast %64 : vector<8x128xf32> to vector<1x8x128xf32>
      tpu.vector_store %arg12[%69, %c0_41, %c0_42], %72 {strides = array<i32>} : memref<1x8x128xf32, #tpu.memory_space<vmem>>, vector<1x8x128xf32>,
    } else {
    }
    %6 = arith.index_cast %arg2 : i32 to index
    %c0 = arith.constant 0 : index
    %c0_3 = arith.constant 0 : index
    %7 = vector.load %arg11[%6, %c0, %c0_3] : memref<1x8x128xf32, #tpu.memory_space<vmem>>, vector<1x8x128xf32>
    %8 = vector.shape_cast %7 : vector<1x8x128xf32> to vector<8x128xf32>
    %9 = arith.index_cast %arg2 : i32 to index
    %c0_4 = arith.constant 0 : index
    %c0_5 = arith.constant 0 : index
    %10 = vector.load %arg12[%9, %c0_4, %c0_5] : memref<1x8x128xf32, #tpu.memory_space<vmem>>, vector<1x8x128xf32>
    %11 = vector.shape_cast %10 : vector<1x8x128xf32> to vector<8x128xf32>
    %c0_6 = arith.constant 0 : index
    %c0_7 = arith.constant 0 : index
    %12 = vector.load %arg10[%c0_6, %c0_7] : memref<8x128xf32, #tpu.memory_space<vmem>>, vector<8x128xf32>
    %c0_8 = arith.constant 0 : index
    %c0_9 = arith.constant 0 : index
    %13 = vector.load %arg6[%c0_8, %c0_9] : memref<128x128xf32, #tpu.memory_space<vmem>>, vector<128x128xf32>
    %cst = arith.constant dense<0.000000e+00> : vector<8x128xf32>
    %14 = tpu.matmul %8, %13, %cst {dimension_numbers = #tpu.dot_dimension_numbers<[1], [0], [0], [1], [0, 0, 1, 1], [], []>} : vector<8x128xf32>, vector<128x128xf32>, vector<8x128xf32> -> vector<8x128xf32>
    %15 = arith.addf %12, %14 : vector<8x128xf32>
    %c0_10 = arith.constant 0 : index
    %c0_11 = arith.constant 0 : index
    %16 = vector.load %arg10[%c0_10, %c0_11] : memref<8x128xf32, #tpu.memory_space<vmem>>, vector<8x128xf32>
    tpu.vector_store %arg10[%c0_10, %c0_11], %15 {strides = array<i32>} : memref<8x128xf32, #tpu.memory_space<vmem>>, vector<8x128xf32>,
    %c0_12 = arith.constant 0 : index
    %c0_13 = arith.constant 0 : index
    %17 = vector.load %arg10[%c0_12, %c0_13] : memref<8x128xf32, #tpu.memory_space<vmem>>, vector<8x128xf32>
    %c0_14 = arith.constant 0 : index
    %c0_15 = arith.constant 0 : index
    %18 = vector.load %arg7[%c0_14, %c0_15] : memref<128x128xf32, #tpu.memory_space<vmem>>, vector<128x128xf32>
    %cst_16 = arith.constant dense<0.000000e+00> : vector<8x128xf32>
    %19 = tpu.matmul %11, %18, %cst_16 {dimension_numbers = #tpu.dot_dimension_numbers<[1], [0], [0], [1], [0, 0, 1, 1], [], []>} : vector<8x128xf32>, vector<128x128xf32>, vector<8x128xf32> -> vector<8x128xf32>
    %20 = arith.addf %17, %19 : vector<8x128xf32>
    %c0_17 = arith.constant 0 : index
    %c0_18 = arith.constant 0 : index
    %21 = vector.load %arg10[%c0_17, %c0_18] : memref<8x128xf32, #tpu.memory_space<vmem>>, vector<8x128xf32>
    tpu.vector_store %arg10[%c0_17, %c0_18], %20 {strides = array<i32>} : memref<8x128xf32, #tpu.memory_space<vmem>>, vector<8x128xf32>,
    %c0_i32_19 = arith.constant 0 : i32
    %22 = arith.cmpi eq, %arg2, %c0_i32_19 : i32
    %23 = arith.extui %22 : i1 to i32
    %c0_i32_20 = arith.constant 0 : i32
    %24 = arith.cmpi ne, %23, %c0_i32_20 : i32
    scf.if %24 {
      %c0_21 = arith.constant 0 : index
      %c0_22 = arith.constant 0 : index
      %25 = vector.load %arg10[%c0_21, %c0_22] : memref<8x128xf32, #tpu.memory_space<vmem>>, vector<8x128xf32>
      %c0_23 = arith.constant 0 : index
      %c0_24 = arith.constant 0 : index
      %26 = vector.load %arg9[%c0_23, %c0_24] : memref<8x128xf32, #tpu.memory_space<vmem>>, vector<8x128xf32>
      tpu.vector_store %arg9[%c0_23, %c0_24], %25 {strides = array<i32>} : memref<8x128xf32, #tpu.memory_space<vmem>>, vector<8x128xf32>,
    } else {
    }
    return
  }
  func.func @transform_0(%arg0: i32, %arg1: i32, %arg2: i32) -> (i32, i32) {
    %c0_i32 = arith.constant 0 : i32
    return %arg0, %arg2 : i32, i32
  }
  func.func @transform_1(%arg0: i32, %arg1: i32, %arg2: i32) -> (i32, i32) {
    %c0_i32 = arith.constant 0 : i32
    %c0_i32_0 = arith.constant 0 : i32
    return %c0_i32, %arg2 : i32, i32
  }
  func.func @transform_2(%arg0: i32, %arg1: i32, %arg2: i32) -> (i32, i32) {
    %c0_i32 = arith.constant 0 : i32
    %c0_i32_0 = arith.constant 0 : i32
    return %c0_i32, %arg2 : i32, i32
  }
  func.func @transform_3(%arg0: i32, %arg1: i32, %arg2: i32) -> (i32, i32) {
    %c0_i32 = arith.constant 0 : i32
    return %arg2, %arg1 : i32, i32
  }
  func.func @transform_4(%arg0: i32, %arg1: i32, %arg2: i32) -> (i32, i32) {
    %c0_i32 = arith.constant 0 : i32
    return %arg2, %arg1 : i32, i32
  }
  func.func @transform_5(%arg0: i32, %arg1: i32, %arg2: i32) -> (i32, i32) {
    %c0_i32 = arith.constant 0 : i32
    %c0_i32_0 = arith.constant 0 : i32
    return %c0_i32, %arg1 : i32, i32
  }
  func.func @transform_6(%arg0: i32, %arg1: i32, %arg2: i32) -> (i32, i32) {
    %c0_i32 = arith.constant 0 : i32
    return %arg0, %arg1 : i32, i32
  }
}

</mosaic_0001>

<bundles_post_ra>
// kernel: powl_forward.1
= control target key start
LH: loop header
LB: loop body
LE: loop exit
PB: predicated region body
PF: predicated region fallthrough
CT: control target
= control target key end

     0   :  { %s378_s0 = inlined_call_operand.vmem [shape: f32[8,128], index: 0, kind: input, shape index: {}]   ;;  %s379_s1 = inlined_call_operand.vmem [shape: f32[1,128], index: 1, kind: input, shape index: {}]   ;;  %s380_s2 = inlined_call_operand.vmem [shape: f32[1,128], index: 2, kind: input, shape index: {}]   ;;  %s381_s3 = inlined_call_operand.vmem [shape: f32[128,128], index: 3, kind: input, shape index: {}]   ;;  %s382_s4 = inlined_call_operand.vmem [shape: f32[128,128], index: 4, kind: input, shape index: {}]   ;;  %s383_s5 = inlined_call_operand.vmem [shape: f32[1,128], index: 5, kind: input, shape index: {}]   ;;  %s384_s6 = inlined_call_operand.hbm [shape: f32[8,128], index: 6, kind: output, shape index: {}]  }
   0x1   :  { %v100_v0 = vld [vmem:[%s381_s3 + $0x78] sm:$0xff]  ;;  %v99_v1 = vld [vmem:[%s381_s3 + $0x70] sm:$0xff]  ;;  %v98_v4 = vld [vmem:[%s381_s3 + $0x68] sm:$0xff] }
   0x2   :  { %v139_v2 = vld [vmem:[%s382_s4 + $0x78] sm:$0xff]  ;;  %101 = vmatpush.msra.mxu0 %v100_v0  ;;  %v138_v3 = vld [vmem:[%s382_s4 + $0x70] sm:$0xff]  ;;  %v137_v5 = vld [vmem:[%s382_s4 + $0x68] sm:$0xff] }
   0x3   :  { %140 = vmatpush.msra.mxu1 %v139_v2  ;;  %v97_v6 = vld [vmem:[%s381_s3 + $0x60] sm:$0xff]  ;;  %v96_v8 = vld [vmem:[%s381_s3 + $0x58] sm:$0xff]  ;;  %v95_v10 = vld [vmem:[%s381_s3 + $0x50] sm:$0xff] }
   0x4   :  { %102 = vmatpush.msra.mxu0 %v99_v1  ;;  %v136_v7 = vld [vmem:[%s382_s4 + $0x60] sm:$0xff]  ;;  %v135_v9 = vld [vmem:[%s382_s4 + $0x58] sm:$0xff]  ;;  %v134_v11 = vld [vmem:[%s382_s4 + $0x50] sm:$0xff] }
   0x5   :  { %141 = vmatpush.msra.mxu1 %v138_v3  ;;  %v94_v12 = vld [vmem:[%s381_s3 + $0x48] sm:$0xff]  ;;  %v37_v14 = vld [vmem:[%s378_s0] sm:$0xff]  ;;  %v92_v18 = vld [vmem:[%s381_s3 + $0x38] sm:$0xff] }
   0x6   :  { %103 = vmatpush.msra.mxu0 %v98_v4  ;;  %v133_v13 = vld [vmem:[%s382_s4 + $0x48] sm:$0xff]  ;;  %v38_v15 = vmax.f32 %v37_v14, 0.0  ;;  %v93_v16 = vld [vmem:[%s381_s3 + $0x40] sm:$0xff]  ;;  %v131_v19 = vld [vmem:[%s382_s4 + $0x38] sm:$0xff] }
   0x7   :  { %142 = vmatpush.msra.mxu1 %v137_v5  ;;  %v132_v17 = vld [vmem:[%s382_s4 + $0x40] sm:$0xff] }
   0x8   :  { %104 = vmatpush.msra.mxu0 %v97_v6  ;;  %192 = vlog2.f32 %v38_v15 }
   0x9   :  { %143 = vmatpush.msra.mxu1 %v136_v7 }
   0xa   :  { %105 = vmatpush.msra.mxu0 %v96_v8 }
   0xb   :  { %144 = vmatpush.msra.mxu1 %v135_v9 }
   0xc   :  { %106 = vmatpush.msra.mxu0 %v95_v10 }
   0xd   :  { %145 = vmatpush.msra.mxu1 %v134_v11 }
   0xe   :  { %107 = vmatpush.msra.mxu0 %v94_v12 }
   0xf   :  { %146 = vmatpush.msra.mxu1 %v133_v13 }
  0x10   :  { %11 = vsyncpa [#allocation6], 0  ;;  %108 = vmatpush.msra.mxu0 %v93_v16  ;;  %v91_v20 = vld [vmem:[%s381_s3 + $0x30] sm:$0xff]  ;;  %v90_v22 = vld [vmem:[%s381_s3 + $0x28] sm:$0xff]  ;;  %v193_v26 = vpop.eup %192  ;;  %v224_v42 = vmov 0.0   ;;  %vm55_vm2 = vcmp.eq.f32.partialorder %v38_v15, 0.0 }
  0x11   :  { %147 = vmatpush.msra.mxu1 %v132_v17  ;;  %v130_v21 = vld [vmem:[%s382_s4 + $0x30] sm:$0xff]  ;;  %v129_v23 = vld [vmem:[%s382_s4 + $0x28] sm:$0xff]  ;;  %v189_v24 = vld [vmem:[%s379_s1] ss:$0 sm:$0xff]  ;;  %v40_v29 = vmul.f32 0.6931472, %v193_v26 }
  0x12   :  { %109 = vmatpush.msra.mxu0 %v92_v18  ;;  %v190_v25 = vld [vmem:[%s380_s2] ss:$0 sm:$0xff]  ;;  %v88_v32 = vld [vmem:[%s381_s3 + $0x18] sm:$0xff]  ;;  %v87_v36 = vld [vmem:[%s381_s3 + $0x10] sm:$0xff]  ;;  %s225_s19 = smov [#allocation5]   ;;  %s174_s23 = sshll.u32 %s384_s6, 4  ;;  %s175_s23 = int_to_ptr.hbm [resolvable:$true] %s174_s23 }
  0x13   :  { %148 = vmatpush.msra.mxu1 %v131_v19  ;;  %v89_v27 = vld [vmem:[%s381_s3 + $0x20] sm:$0xff]  ;;  %v127_v33 = vld [vmem:[%s382_s4 + $0x18] sm:$0xff]  ;;  %v46_v34 = vmul.f32 %v189_v24, %v40_v29  ;;  %v52_v35 = vmul.f32 %v190_v25, %v40_v29  ;;  %v126_v37 = vld [vmem:[%s382_s4 + $0x10] sm:$0xff]  ;;  %s172_s20 = sshll.u32 %s225_s19, 4  ;;  %s173_s20 = int_to_ptr.vmem [resolvable:$true] %s172_s20 }
  0x14   :  { %110 = vmatpush.msra.mxu0 %v91_v20  ;;  %v128_v28 = vld [vmem:[%s382_s4 + $0x20] sm:$0xff]  ;;  %v86_v40 = vld [vmem:[%s381_s3 + $0x8] sm:$0xff] }
  0x15   :  { %149 = vmatpush.msra.mxu1 %v130_v21  ;;  %v41_v30 = vld [vmem:[%s379_s1] sm:$0x1]  ;;  %v47_v38 = vmul.f32 1.442695, %v46_v34  ;;  %v53_v39 = vmul.f32 1.442695, %v52_v35 }
  0x16   :  { %111 = vmatpush.msra.mxu0 %v90_v22  ;;  %v42_v31 = vld [vmem:[%s380_s2] sm:$0x1]  ;;  %vm56_vm0 = vcmp.eq.f32.partialorder %v41_v30, 0.0  ;;  %v125_v41 = vld [vmem:[%s382_s4 + $0x8] sm:$0xff] }
  0x17   :  { %150 = vmatpush.msra.mxu1 %v129_v23  ;;  %vm62_vm1 = vcmp.eq.f32.partialorder %v42_v31, 0.0  ;;  %194 = vpow2.f32 %v47_v38  ;;  %v57_v43 = vsel %vm56_vm0, 1.0, %v224_v42  ;;  %v85_v45 = vld [vmem:[%s381_s3] sm:$0xff] }
  0x18   :  { %112 = vmatpush.msra.mxu0 %v89_v27  ;;  %196 = vpow2.f32 %v53_v39  ;;  %v63_v44 = vsel %vm62_vm1, 1.0, %v224_v42  ;;  %v124_v46 = vld [vmem:[%s382_s4] sm:$0xff]  ;;  %v59_v47 = vperm.slane %v57_v43, 0 }
  0x19   :  { %151 = vmatpush.msra.mxu1 %v128_v28  ;;  %v65_v48 = vperm.slane %v63_v44, 0  ;;  %v191_v55 = vld [vmem:[%s383_s5] ss:$0 sm:$0xff] }
  0x1a   :  { %113 = vmatpush.msra.mxu0 %v88_v32 }
  0x1b   :  { %152 = vmatpush.msra.mxu1 %v127_v33 }
  0x1c   :  { %114 = vmatpush.msra.mxu0 %v87_v36 }
  0x1d   :  { %153 = vmatpush.msra.mxu1 %v126_v37  ;;  %v195_v49 = vpop.eup %194 }
  0x1e   :  { %115 = vmatpush.msra.mxu0 %v86_v40  ;;  %v197_v50 = vpop.eup %196  ;;  %v61_v51 = vsel %vm55_vm2, %v59_v47, %v195_v49 }
  0x1f   :  { %154 = vmatpush.msra.mxu1 %v125_v41  ;;  %v68_v52 = vand.u32 2147483647, %v61_v51  ;;  %v67_v53 = vsel %vm55_vm2, %v65_v48, %v197_v50 }
  0x20   :  { %116 = vmatpush.msra.mxu0 %v85_v45  ;;  %v71_v54 = vand.u32 2147483647, %v67_v53 }
  0x21   :  { %155 = vmatpush.msra.mxu1 %v124_v46  ;;  %vm69_vm3 = vcmp.eq.f32.partialorder %v68_v52, inf }
  0x22   :  { %vm183_vm4 = vmneg %vm69_vm3  ;;  %vm72_vm5 = vcmp.eq.f32.partialorder %v71_v54, inf }
  0x23   :  { %184 = vmatmul.msk.f32.vlgmr.msra.gmra.mxu0 %vm183_vm4, %v61_v51  ;;  %vm185_vm6 = vmneg %vm72_vm5 }
  0x24   :  { %186 = vmatmul.msk.f32.vlgmr.msra.gmra.mxu1 %vm185_vm6, %v67_v53 }
  0xa0   :  { %v118_v56 = vpop.f32.mrf.mxu0 }
  0xa1   :  { %v121_v57 = vadd.f32 %v191_v55, %v118_v56  ;;  %v157_v58 = vpop.f32.mrf.mxu1 }
  0xa3   :  { %v160_v59 = vadd.f32 %v157_v58, %v121_v57 }
  0xa5   :  { %166 = vst [vmem:[#allocation5] sm:$0xff] %v160_v59 }
  0xa6   :  { %177 = dma.vmem_to_hbm [thread:$0]  %s173_s20, 128, %s175_s23, [#allocation6]  }
  0xa7   :  { %222 = dma.done.wait [#allocation6], 128  }
  0xa8   :  { %223 = vsyncadd [#allocation6], 4294967168 }
  0xa9   :  { %182 = vsyncpa [#allocation6], 1 }

</bundles_post_ra>
